<compile_context>
chip_gen: v7x
topology: tpu7x:2x2x1
jax: 0.10.0
libtpu: 0.0.40
codegen_flags: <defaults>
</compile_context>

<pallas_src>
import functools

import jax
import jax.numpy as jnp
import numpy as np
from jax.experimental import pallas as pl
from jax.experimental.pallas import tpu as pltpu


def _round_up(x: int, m: int) -> int:
    return (x + m - 1) // m * m


def _pick_tile_s(s_pad: int) -> int:
    for cand in (512, 256, 128):
        if s_pad % cand == 0:
            return cand
    return 128


def _make_lgcn_kernel(num_layers: int, tile_s: int):
    """Kernel computing the full multi-layer LightGCN propagation + average."""
    inv = 1.0 / float(num_layers + 1)

    def kernel(a_ref, u_emb_ref, s_emb_ref, u_out_ref, s_out_ref,
               u_cur, s_cur, u_new, s_new, u_acc, s_acc):
        l = pl.program_id(0)
        j = pl.program_id(1)
        last_l = pl.num_programs(0) - 1
        last_j = pl.num_programs(1) - 1

        # First grid step: load embeddings into persistent scratch + init acc.
        @pl.when((l == 0) & (j == 0))
        def _init():
            u_cur[...] = u_emb_ref[...]
            s_cur[...] = s_emb_ref[...]
            u_acc[...] = u_emb_ref[...].astype(jnp.float32)
            s_acc[...] = s_emb_ref[...].astype(jnp.float32)

        # New layer: reset the u-side reduction accumulator.
        @pl.when(j == 0)
        def _zero_u_new():
            u_new[...] = jnp.zeros_like(u_new)

        a = a_ref[...]                                  # (U_pad, tile_s) bf16
        off = pl.multiple_of(j * tile_s, tile_s)
        s_tile = s_cur[pl.ds(off, tile_s), :]           # (tile_s, D_pad) bf16

        # u_new += A[:, j_tile] @ s_cur[j_tile]   (reduction over S tiles, MXU bf16)
        u_new[...] += jnp.dot(a, s_tile, preferred_element_type=jnp.float32)

        # s_new[j_tile] = A[:, j_tile]^T @ u_cur  (contract over U; no transpose
        # materialized — the MXU handles the transposed-LHS form directly).
        s_new[pl.ds(off, tile_s), :] = jax.lax.dot_general(
            a, u_cur[...],
            dimension_numbers=(((0,), (0,)), ((), ())),
            preferred_element_type=jnp.float32)

        # End of a layer: fold into the running sum, roll the layer state.
        @pl.when(j == last_j)
        def _finish_layer():
            u_acc[...] += u_new[...]
            s_acc[...] += s_new[...]
            u_cur[...] = u_new[...].astype(u_cur.dtype)
            s_cur[...] = s_new[...].astype(s_cur.dtype)

        # Very last grid step: emit the layer-averaged embeddings (f32).
        @pl.when((l == last_l) & (j == last_j))
        def _finalize():
            u_out_ref[...] = u_acc[...] * inv
            s_out_ref[...] = s_acc[...] * inv

    return kernel


@functools.partial(jax.jit, static_argnames=("num_layers",))
def lgcn_forward(a_norm, user_emb, spot_emb, *, num_layers):
    """Pallas-backed LGCN.forward(): returns (user_out_concat, spot_out_concat)."""
    U, S = a_norm.shape
    D = user_emb.shape[1]

    U_pad = _round_up(U, 16)      # bf16 sublane multiple (contraction axis for s_new)
    D_pad = _round_up(D, 128)     # lane-dense output stores
    S_pad = _round_up(S, 128)
    tile_s = _pick_tile_s(S_pad)
    n_s_tiles = S_pad // tile_s

    # Cast MXU operands to bf16 at the boundary; pad with zeros (padded rows /
    # cols of A are zero, so padded regions contribute nothing and stay zero).
    a_p = jnp.pad(a_norm.astype(jnp.bfloat16), ((0, U_pad - U), (0, S_pad - S)))
    u_p = jnp.pad(user_emb.astype(jnp.bfloat16), ((0, U_pad - U), (0, D_pad - D)))
    s_p = jnp.pad(spot_emb.astype(jnp.bfloat16), ((0, S_pad - S), (0, D_pad - D)))

    kernel = _make_lgcn_kernel(num_layers, tile_s)

    # Explicit VMEM budget: A tile double-buffered + resident embeddings,
    # outputs, and the six scratch buffers. Clamp to v7x's 64 MiB per-TC cap.
    est = (2 * U_pad * tile_s * 2                       # A tiles (bf16, 2-deep)
           + 2 * (U_pad + S_pad) * D_pad * 2            # resident bf16 emb inputs
           + 2 * (U_pad + S_pad) * D_pad * 4            # f32 outputs
           + (U_pad + S_pad) * D_pad * (2 + 4 + 4))     # cur(bf16)+new(f32)+acc(f32)
    vmem_limit = int(min(64 * 1024 * 1024, max(32 * 1024 * 1024, 2 * est)))

    u_out, s_out = pl.pallas_call(
        kernel,
        out_shape=(
            jax.ShapeDtypeStruct((U_pad, D_pad), jnp.float32),
            jax.ShapeDtypeStruct((S_pad, D_pad), jnp.float32),
        ),
        grid_spec=pltpu.PrefetchScalarGridSpec(
            num_scalar_prefetch=0,
            grid=(num_layers, n_s_tiles),
            in_specs=[
                # Adjacency: streamed S-tiles (pipelines under the matmuls).
                pl.BlockSpec((U_pad, tile_s), lambda l, j: (0, j)),
                # Embeddings: small, VMEM-resident for the whole grid.
                pl.BlockSpec((U_pad, D_pad), lambda l, j: (0, 0)),
                pl.BlockSpec((S_pad, D_pad), lambda l, j: (0, 0)),
            ],
            out_specs=(
                pl.BlockSpec((U_pad, D_pad), lambda l, j: (0, 0)),
                pl.BlockSpec((S_pad, D_pad), lambda l, j: (0, 0)),
            ),
            scratch_shapes=[
                pltpu.VMEM((U_pad, D_pad), jnp.bfloat16),   # u_cur
                pltpu.VMEM((S_pad, D_pad), jnp.bfloat16),   # s_cur
                pltpu.VMEM((U_pad, D_pad), jnp.float32),    # u_new
                pltpu.VMEM((S_pad, D_pad), jnp.float32),    # s_new
                pltpu.VMEM((U_pad, D_pad), jnp.float32),    # u_acc
                pltpu.VMEM((S_pad, D_pad), jnp.float32),    # s_acc
            ],
        ),
        compiler_params=pltpu.CompilerParams(
            dimension_semantics=("arbitrary", "arbitrary"),
            vmem_limit_bytes=vmem_limit,
        ),
    )(a_p, u_p, s_p)

    return u_out[:U, :D], s_out[:S, :D]


# ----------------------------- glue / setup ---------------------------------


def build_normalized_adjacency(edge_u, edge_s, num_users, num_spots):
    """Replicates LGCNConv.__init__ degree computation + 1e-6 epsilon.

    Note: zero-degree rows/cols of `counts` are all-zero, so the large
    1/sqrt(1e-6) factor never produces nonzero output — matches PyTorch.
    """
    ones = jnp.ones_like(edge_u, dtype=jnp.float32)
    user_div = jnp.zeros((num_users,), jnp.float32).at[edge_u].add(ones)
    spot_div = jnp.zeros((num_spots,), jnp.float32).at[edge_s].add(ones)
    user_div = jnp.where(user_div == 0, 1e-6, user_div)
    spot_div = jnp.where(spot_div == 0, 1e-6, spot_div)

    counts = jnp.zeros((num_users, num_spots), jnp.float32).at[edge_u, edge_s].add(1.0)
    a_norm = counts / (jnp.sqrt(user_div)[:, None] * jnp.sqrt(spot_div)[None, :])
    return a_norm, user_div, spot_div


def reference_lgcn(edge_u, edge_s, user_div, spot_div, user_emb, spot_emb, num_layers):
    """Pure-JAX reference mirroring the PyTorch gather/scatter formulation."""
    inv_sqrt_u = 1.0 / jnp.sqrt(user_div)
    inv_sqrt_s = 1.0 / jnp.sqrt(spot_div)

    def conv(user_x, spot_x):
        spot_e = spot_x[edge_s] * inv_sqrt_s[edge_s][:, None]
        user_e = user_x[edge_u] * inv_sqrt_u[edge_u][:, None]
        spot_out = jnp.zeros_like(spot_x).at[edge_s].add(user_e)
        user_out = jnp.zeros_like(user_x).at[edge_u].add(spot_e)
        spot_out = spot_out * inv_sqrt_s[:, None]
        user_out = user_out * inv_sqrt_u[:, None]
        return user_out, spot_out

    u_acc, s_acc = user_emb, spot_emb
    u_cur, s_cur = user_emb, spot_emb
    for _ in range(num_layers):
        u_cur, s_cur = conv(u_cur, s_cur)
        u_acc = u_acc + u_cur
        s_acc = s_acc + s_cur
    return u_acc / (num_layers + 1), s_acc / (num_layers + 1)


if __name__ == "__main__":
    num_users, num_spots, dim = 16, 24, 32
    num_edges, num_layers = 64, 3

    key = jax.random.PRNGKey(0)
    k1, k2, k3, k4 = jax.random.split(key, 4)
    # deterministic "embedding weights" (nn.Embedding.weight analogues)
    user_emb = jax.random.normal(k1, (num_users, dim), jnp.float32)
    spot_emb = jax.random.normal(k2, (num_spots, dim), jnp.float32)
    # deterministic bipartite edge index ('user','visit','spot'); the reversed
    # ('spot','revvisit','user') edge index is the same edges flipped.
    edge_u = jax.random.randint(k3, (num_edges,), 0, num_users)
    edge_s = jax.random.randint(k4, (num_edges,), 0, num_spots)

    a_norm, user_div, spot_div = build_normalized_adjacency(
        edge_u, edge_s, num_users, num_spots
    )

    user_out, spot_out = lgcn_forward(
        a_norm, user_emb, spot_emb, num_layers=num_layers
    )
    jax.block_until_ready((user_out, spot_out))

    # correctness check against the edge-based (PyTorch-semantics) f32 reference;
    # tolerance loosened for the bf16 MXU operands (f32 accumulation).
    user_ref, spot_ref = reference_lgcn(
        edge_u, edge_s, user_div, spot_div, user_emb, spot_emb, num_layers
    )
    np.testing.assert_allclose(np.asarray(user_out), np.asarray(user_ref),
                               rtol=5e-2, atol=5e-2)
    np.testing.assert_allclose(np.asarray(spot_out), np.asarray(spot_ref),
                               rtol=5e-2, atol=5e-2)

    print("KERNEL_OK")
</pallas_src>

<mosaic_0001>
module attributes {stable_mosaic.version = 11 : i64} {
  func.func @kernel(%arg0: i32, %arg1: i32, %arg2: memref<16x128xbf16, #tpu.memory_space<vmem>>, %arg3: memref<16x128xbf16, #tpu.memory_space<vmem>>, %arg4: memref<128x128xbf16, #tpu.memory_space<vmem>>, %arg5: memref<16x128xf32, #tpu.memory_space<vmem>>, %arg6: memref<128x128xf32, #tpu.memory_space<vmem>>, %arg7: memref<16x128xbf16, #tpu.memory_space<vmem>>, %arg8: memref<128x128xbf16, #tpu.memory_space<vmem>>, %arg9: memref<16x128xf32, #tpu.memory_space<vmem>>, %arg10: memref<128x128xf32, #tpu.memory_space<vmem>>, %arg11: memref<16x128xf32, #tpu.memory_space<vmem>>, %arg12: memref<128x128xf32, #tpu.memory_space<vmem>>) attributes {dimension_semantics = [#tpu.dimension_semantics<arbitrary>, #tpu.dimension_semantics<arbitrary>], iteration_bounds = array<i64: 3, 1>, scalar_prefetch = 0 : i64, scratch_operands = 6 : i64, tpu.core_type = #tpu.core_type<tc>, window_params = [{transform_indices = @transform_0, window_bounds = array<i64: 16, 128>}, {pipeline_mode = #tpu.pipeline_mode<synchronous>, transform_indices = @transform_1, window_bounds = array<i64: 16, 128>}, {pipeline_mode = #tpu.pipeline_mode<synchronous>, transform_indices = @transform_2, window_bounds = array<i64: 128, 128>}, {pipeline_mode = #tpu.pipeline_mode<synchronous>, transform_indices = @transform_3, window_bounds = array<i64: 16, 128>}, {pipeline_mode = #tpu.pipeline_mode<synchronous>, transform_indices = @transform_4, window_bounds = array<i64: 128, 128>}]} {
    %c0_i32 = arith.constant 0 : i32
    %0 = arith.cmpi eq, %arg0, %c0_i32 : i32
    %c0_i32_0 = arith.constant 0 : i32
    %1 = arith.cmpi eq, %arg1, %c0_i32_0 : i32
    %2 = arith.andi %0, %1 : i1
    %3 = arith.extui %2 : i1 to i32
    %c0_i32_1 = arith.constant 0 : i32
    %4 = arith.cmpi ne, %3, %c0_i32_1 : i32
    scf.if %4 {
      %c0_18 = arith.constant 0 : index
      %c0_19 = arith.constant 0 : index
      %29 = vector.load %arg3[%c0_18, %c0_19] : memref<16x128xbf16, #tpu.memory_space<vmem>>, vector<16x128xbf16>
      %c0_20 = arith.constant 0 : index
      %c0_21 = arith.constant 0 : index
      %30 = vector.load %arg7[%c0_20, %c0_21] : memref<16x128xbf16, #tpu.memory_space<vmem>>, vector<16x128xbf16>
      tpu.vector_store %arg7[%c0_20, %c0_21], %29 {strides = array<i32>} : memref<16x128xbf16, #tpu.memory_space<vmem>>, vector<16x128xbf16>,
      %c0_22 = arith.constant 0 : index
      %c0_23 = arith.constant 0 : index
      %31 = vector.load %arg4[%c0_22, %c0_23] : memref<128x128xbf16, #tpu.memory_space<vmem>>, vector<128x128xbf16>
      %c0_24 = arith.constant 0 : index
      %c0_25 = arith.constant 0 : index
      %32 = vector.load %arg8[%c0_24, %c0_25] : memref<128x128xbf16, #tpu.memory_space<vmem>>, vector<128x128xbf16>
      tpu.vector_store %arg8[%c0_24, %c0_25], %31 {strides = array<i32>} : memref<128x128xbf16, #tpu.memory_space<vmem>>, vector<128x128xbf16>,
      %c0_26 = arith.constant 0 : index
      %c0_27 = arith.constant 0 : index
      %33 = vector.load %arg3[%c0_26, %c0_27] : memref<16x128xbf16, #tpu.memory_space<vmem>>, vector<16x128xbf16>
      %34 = arith.extf %33 : vector<16x128xbf16> to vector<16x128xf32>
      %c0_28 = arith.constant 0 : index
      %c0_29 = arith.constant 0 : index
      %35 = vector.load %arg11[%c0_28, %c0_29] : memref<16x128xf32, #tpu.memory_space<vmem>>, vector<16x128xf32>
      tpu.vector_store %arg11[%c0_28, %c0_29], %34 {strides = array<i32>} : memref<16x128xf32, #tpu.memory_space<vmem>>, vector<16x128xf32>,
      %c0_30 = arith.constant 0 : index
      %c0_31 = arith.constant 0 : index
      %36 = vector.load %arg4[%c0_30, %c0_31] : memref<128x128xbf16, #tpu.memory_space<vmem>>, vector<128x128xbf16>
      %37 = arith.extf %36 : vector<128x128xbf16> to vector<128x128xf32>
      %c0_32 = arith.constant 0 : index
      %c0_33 = arith.constant 0 : index
      %38 = vector.load %arg12[%c0_32, %c0_33] : memref<128x128xf32, #tpu.memory_space<vmem>>, vector<128x128xf32>
      tpu.vector_store %arg12[%c0_32, %c0_33], %37 {strides = array<i32>} : memref<128x128xf32, #tpu.memory_space<vmem>>, vector<128x128xf32>,
    } else {
    }
    %c0_i32_2 = arith.constant 0 : i32
    %5 = arith.cmpi eq, %arg1, %c0_i32_2 : i32
    %6 = arith.extui %5 : i1 to i32
    %c0_i32_3 = arith.constant 0 : i32
    %7 = arith.cmpi ne, %6, %c0_i32_3 : i32
    scf.if %7 {
      %cst_18 = arith.constant 0.000000e+00 : f32
      %29 = vector.broadcast %cst_18 : f32 to vector<16x128xf32>
      %c0_19 = arith.constant 0 : index
      %c0_20 = arith.constant 0 : index
      %30 = vector.load %arg9[%c0_19, %c0_20] : memref<16x128xf32, #tpu.memory_space<vmem>>, vector<16x128xf32>
      tpu.vector_store %arg9[%c0_19, %c0_20], %29 {strides = array<i32>} : memref<16x128xf32, #tpu.memory_space<vmem>>, vector<16x128xf32>,
    } else {
    }
    %c0 = arith.constant 0 : index
    %c0_4 = arith.constant 0 : index
    %8 = vector.load %arg2[%c0, %c0_4] : memref<16x128xbf16, #tpu.memory_space<vmem>>, vector<16x128xbf16>
    %c128_i32 = arith.constant 128 : i32
    %9 = arith.muli %arg1, %c128_i32 : i32
    %10 = tpu.assume_multiple %9, 128 : i32
    %11 = arith.index_cast %10 : i32 to index
    %c0_5 = arith.constant 0 : index
    %12 = vector.load %arg8[%11, %c0_5] : memref<128x128xbf16, #tpu.memory_space<vmem>>, vector<128x128xbf16>
    %c0_6 = arith.constant 0 : index
    %c0_7 = arith.constant 0 : index
    %13 = vector.load %arg9[%c0_6, %c0_7] : memref<16x128xf32, #tpu.memory_space<vmem>>, vector<16x128xf32>
    %cst = arith.constant dense<0.000000e+00> : vector<16x128xf32>
    %14 = tpu.matmul %8, %12, %cst {dimension_numbers = #tpu.dot_dimension_numbers<[1], [0], [0], [1], [0, 0, 1, 1], [], []>} : vector<16x128xbf16>, vector<128x128xbf16>, vector<16x128xf32> -> vector<16x128xf32>
    %15 = arith.addf %13, %14 : vector<16x128xf32>
    %c0_8 = arith.constant 0 : index
    %c0_9 = arith.constant 0 : index
    %16 = vector.load %arg9[%c0_8, %c0_9] : memref<16x128xf32, #tpu.memory_space<vmem>>, vector<16x128xf32>
    tpu.vector_store %arg9[%c0_8, %c0_9], %15 {strides = array<i32>} : memref<16x128xf32, #tpu.memory_space<vmem>>, vector<16x128xf32>,
    %c0_10 = arith.constant 0 : index
    %c0_11 = arith.constant 0 : index
    %17 = vector.load %arg7[%c0_10, %c0_11] : memref<16x128xbf16, #tpu.memory_space<vmem>>, vector<16x128xbf16>
    %cst_12 = arith.constant dense<0.000000e+00> : vector<128x128xf32>
    %18 = tpu.matmul %8, %17, %cst_12 {dimension_numbers = #tpu.dot_dimension_numbers<[0], [0], [1], [1], [0, 1, 1, 1], [], []>} : vector<16x128xbf16>, vector<16x128xbf16>, vector<128x128xf32> -> vector<128x128xf32>
    %19 = arith.index_cast %10 : i32 to index
    %c0_13 = arith.constant 0 : index
    %20 = vector.load %arg10[%19, %c0_13] : memref<128x128xf32, #tpu.memory_space<vmem>>, vector<128x128xf32>
    tpu.vector_store %arg10[%19, %c0_13], %18 {strides = array<i32>} : memref<128x128xf32, #tpu.memory_space<vmem>>, vector<128x128xf32>,
    %c0_i32_14 = arith.constant 0 : i32
    %21 = arith.cmpi eq, %arg1, %c0_i32_14 : i32
    %22 = arith.extui %21 : i1 to i32
    %c0_i32_15 = arith.constant 0 : i32
    %23 = arith.cmpi ne, %22, %c0_i32_15 : i32
    scf.if %23 {
      %c0_18 = arith.constant 0 : index
      %c0_19 = arith.constant 0 : index
      %29 = vector.load %arg11[%c0_18, %c0_19] : memref<16x128xf32, #tpu.memory_space<vmem>>, vector<16x128xf32>
      %c0_20 = arith.constant 0 : index
      %c0_21 = arith.constant 0 : index
      %30 = vector.load %arg9[%c0_20, %c0_21] : memref<16x128xf32, #tpu.memory_space<vmem>>, vector<16x128xf32>
      %31 = arith.addf %29, %30 : vector<16x128xf32>
      %c0_22 = arith.constant 0 : index
      %c0_23 = arith.constant 0 : index
      %32 = vector.load %arg11[%c0_22, %c0_23] : memref<16x128xf32, #tpu.memory_space<vmem>>, vector<16x128xf32>
      tpu.vector_store %arg11[%c0_22, %c0_23], %31 {strides = array<i32>} : memref<16x128xf32, #tpu.memory_space<vmem>>, vector<16x128xf32>,
      %c0_24 = arith.constant 0 : index
      %c0_25 = arith.constant 0 : index
      %33 = vector.load %arg12[%c0_24, %c0_25] : memref<128x128xf32, #tpu.memory_space<vmem>>, vector<128x128xf32>
      %c0_26 = arith.constant 0 : index
      %c0_27 = arith.constant 0 : index
      %34 = vector.load %arg10[%c0_26, %c0_27] : memref<128x128xf32, #tpu.memory_space<vmem>>, vector<128x128xf32>
      %35 = arith.addf %33, %34 : vector<128x128xf32>
      %c0_28 = arith.constant 0 : index
      %c0_29 = arith.constant 0 : index
      %36 = vector.load %arg12[%c0_28, %c0_29] : memref<128x128xf32, #tpu.memory_space<vmem>>, vector<128x128xf32>
      tpu.vector_store %arg12[%c0_28, %c0_29], %35 {strides = array<i32>} : memref<128x128xf32, #tpu.memory_space<vmem>>, vector<128x128xf32>,
      %c0_30 = arith.constant 0 : index
      %c0_31 = arith.constant 0 : index
      %37 = vector.load %arg9[%c0_30, %c0_31] : memref<16x128xf32, #tpu.memory_space<vmem>>, vector<16x128xf32>
      %38 = arith.truncf %37 : vector<16x128xf32> to vector<16x128xbf16>
      %c0_32 = arith.constant 0 : index
      %c0_33 = arith.constant 0 : index
      %39 = vector.load %arg7[%c0_32, %c0_33] : memref<16x128xbf16, #tpu.memory_space<vmem>>, vector<16x128xbf16>
      tpu.vector_store %arg7[%c0_32, %c0_33], %38 {strides = array<i32>} : memref<16x128xbf16, #tpu.memory_space<vmem>>, vector<16x128xbf16>,
      %c0_34 = arith.constant 0 : index
      %c0_35 = arith.constant 0 : index
      %40 = vector.load %arg10[%c0_34, %c0_35] : memref<128x128xf32, #tpu.memory_space<vmem>>, vector<128x128xf32>
      %41 = arith.truncf %40 : vector<128x128xf32> to vector<128x128xbf16>
      %c0_36 = arith.constant 0 : index
      %c0_37 = arith.constant 0 : index
      %42 = vector.load %arg8[%c0_36, %c0_37] : memref<128x128xbf16, #tpu.memory_space<vmem>>, vector<128x128xbf16>
      tpu.vector_store %arg8[%c0_36, %c0_37], %41 {strides = array<i32>} : memref<128x128xbf16, #tpu.memory_space<vmem>>, vector<128x128xbf16>,
    } else {
    }
    %c2_i32 = arith.constant 2 : i32
    %24 = arith.cmpi eq, %arg0, %c2_i32 : i32
    %c0_i32_16 = arith.constant 0 : i32
    %25 = arith.cmpi eq, %arg1, %c0_i32_16 : i32
    %26 = arith.andi %24, %25 : i1
    %27 = arith.extui %26 : i1 to i32
    %c0_i32_17 = arith.constant 0 : i32
    %28 = arith.cmpi ne, %27, %c0_i32_17 : i32
    scf.if %28 {
      %c0_18 = arith.constant 0 : index
      %c0_19 = arith.constant 0 : index
      %29 = vector.load %arg11[%c0_18, %c0_19] : memref<16x128xf32, #tpu.memory_space<vmem>>, vector<16x128xf32>
      %cst_20 = arith.constant 2.500000e-01 : f32
      %30 = vector.broadcast %cst_20 : f32 to vector<16x128xf32>
      %31 = arith.mulf %29, %30 : vector<16x128xf32>
      %c0_21 = arith.constant 0 : index
      %c0_22 = arith.constant 0 : index
      %32 = vector.load %arg5[%c0_21, %c0_22] : memref<16x128xf32, #tpu.memory_space<vmem>>, vector<16x128xf32>
      tpu.vector_store %arg5[%c0_21, %c0_22], %31 {strides = array<i32>} : memref<16x128xf32, #tpu.memory_space<vmem>>, vector<16x128xf32>,
      %c0_23 = arith.constant 0 : index
      %c0_24 = arith.constant 0 : index
      %33 = vector.load %arg12[%c0_23, %c0_24] : memref<128x128xf32, #tpu.memory_space<vmem>>, vector<128x128xf32>
      %cst_25 = arith.constant 2.500000e-01 : f32
      %34 = vector.broadcast %cst_25 : f32 to vector<128x128xf32>
      %35 = arith.mulf %33, %34 : vector<128x128xf32>
      %c0_26 = arith.constant 0 : index
      %c0_27 = arith.constant 0 : index
      %36 = vector.load %arg6[%c0_26, %c0_27] : memref<128x128xf32, #tpu.memory_space<vmem>>, vector<128x128xf32>
      tpu.vector_store %arg6[%c0_26, %c0_27], %35 {strides = array<i32>} : memref<128x128xf32, #tpu.memory_space<vmem>>, vector<128x128xf32>,
    } else {
    }
    return
  }
  func.func @transform_0(%arg0: i32, %arg1: i32) -> (i32, i32) {
    %c0_i32 = arith.constant 0 : i32
    %c0_i32_0 = arith.constant 0 : i32
    return %c0_i32, %arg1 : i32, i32
  }
  func.func @transform_1(%arg0: i32, %arg1: i32) -> (i32, i32) {
    %c0_i32 = arith.constant 0 : i32
    %c0_i32_0 = arith.constant 0 : i32
    %c0_i32_1 = arith.constant 0 : i32
    return %c0_i32, %c0_i32_0 : i32, i32
  }
  func.func @transform_2(%arg0: i32, %arg1: i32) -> (i32, i32) {
    %c0_i32 = arith.constant 0 : i32
    %c0_i32_0 = arith.constant 0 : i32
    %c0_i32_1 = arith.constant 0 : i32
    return %c0_i32, %c0_i32_0 : i32, i32
  }
  func.func @transform_3(%arg0: i32, %arg1: i32) -> (i32, i32) {
    %c0_i32 = arith.constant 0 : i32
    %c0_i32_0 = arith.constant 0 : i32
    %c0_i32_1 = arith.constant 0 : i32
    return %c0_i32, %c0_i32_0 : i32, i32
  }
  func.func @transform_4(%arg0: i32, %arg1: i32) -> (i32, i32) {
    %c0_i32 = arith.constant 0 : i32
    %c0_i32_0 = arith.constant 0 : i32
    %c0_i32_1 = arith.constant 0 : i32
    return %c0_i32, %c0_i32_0 : i32, i32
  }
}

</mosaic_0001>

<bundles_post_ra>
// kernel: lgcn_forward.1
= control target key start
LH: loop header
LB: loop body
LE: loop exit
PB: predicated region body
PF: predicated region fallthrough
CT: control target
= control target key end

     0   :  { %10 = vsyncpa [#allocation9], 0  ;;  %s1061_s15 = smov 0   ;;  %s1063_s16 = smov 0   ;;  %s1236_s0 = inlined_call_operand.vmem [shape: bf16[16,128], index: 0, kind: input, shape index: {}]   ;;  %s1237_s1 = inlined_call_operand.vmem [shape: bf16[16,128], index: 1, kind: input, shape index: {}]   ;;  %s1238_s2 = inlined_call_operand.vmem [shape: bf16[128,128], index: 2, kind: input, shape index: {}]   ;;  %s1239_s3 = inlined_call_operand.hbm [shape: f32[16,128], index: 3, kind: output, shape index: {0}]   ;;  %s1240_s4 = inlined_call_operand.vmem [shape: f32[128,128], index: 4, kind: output, shape index: {1}]  }
   0x1   :  { %s1065_s17 = smov 0  }
   0x2 LB: > { %s802_s18 = sadd.s32 4294967295, %s1029_s17   ;;  %s28_s19 = sadd.s32 1, %s1025_s16  ;;  %s1029_s17 = sphi %s1065_s17, %s16_s17   ;;  %s1025_s16 = sphi %s1063_s16, %s1243_s16   ;;  %s1021_s15 = sphi %s1061_s15, %s1242_s15  }
   0x3   : > { %p30_p0 = scmp.ge.s32.totalorder %s28_s19, 3  ;;  %p805_p1 = scmp.ge.s32.totalorder %s1029_s17, 1 }
   0x4   : > { %p167_p2 = scmp.lt.s32.totalorder %s1029_s17, 4 }
   0x5   : > { %s1245_s19 = smov (%p30_p0, %s28_s19), 0 }
   0x6   : > { %p168_p3 = pnand %p805_p1, %p167_p2 }
   0x7   : > { %p192_p4 = scmp.eq.s32.totalorder (!%p168_p3), %s1021_s15, 0 }
   0x8   : > { %171 = sbr.rel (%p168_p3) target bundleno = 417 (0x1a1), region = 32 }
   0xf   : > { %197 = sbr.rel (!%p192_p4) target bundleno = 31 (0x1f), region = 36  ;;  %v967_v0 = vld [vmem:[%s1237_s1] sm:$0xff] (%p192_p4)   ;;  %v969_v2 = vld [vmem:[%s1238_s2 + $0x8] sm:$0xff] (%p192_p4)   ;;  %v970_v3 = vld [vmem:[%s1238_s2 + $0x10] sm:$0xff] (%p192_p4)  }
  0x10   : > { %v968_v1 = vld [vmem:[%s1238_s2] sm:$0xff] (%p192_p4)   ;;  %206 = vst [vmem:[#allocation2] sm:$0xff] (%p192_p4), %v967_v0  ;;  %272 = vst [vmem:[#allocation3 + $0x8] sm:$0xff] (%p192_p4), %v969_v2  ;;  %v971_v4 = vld [vmem:[%s1238_s2 + $0x18] sm:$0xff] (%p192_p4)  }
  0x11   : > { %271 = vst [vmem:[#allocation3] sm:$0xff] (%p192_p4), %v968_v1  ;;  %273 = vst [vmem:[#allocation3 + $0x10] sm:$0xff] (%p192_p4), %v970_v3  ;;  %v972_v5 = vld [vmem:[%s1238_s2 + $0x20] sm:$0xff] (%p192_p4)   ;;  %v973_v6 = vld [vmem:[%s1238_s2 + $0x28] sm:$0xff] (%p192_p4)  }
  0x12   : > { %274 = vst [vmem:[#allocation3 + $0x18] sm:$0xff] (%p192_p4), %v971_v4  ;;  %275 = vst [vmem:[#allocation3 + $0x20] sm:$0xff] (%p192_p4), %v972_v5  ;;  %v974_v7 = vld [vmem:[%s1238_s2 + $0x30] sm:$0xff] (%p192_p4)   ;;  %v975_v8 = vld [vmem:[%s1238_s2 + $0x38] sm:$0xff] (%p192_p4)  }
  0x13   : > { %276 = vst [vmem:[#allocation3 + $0x28] sm:$0xff] (%p192_p4), %v973_v6  ;;  %277 = vst [vmem:[#allocation3 + $0x30] sm:$0xff] (%p192_p4), %v974_v7  ;;  %v833_v9 = vld [vmem:[%s1237_s1] sm:$0xff] (%p192_p4)   ;;  %v868_v11 = vld [vmem:[%s1238_s2 + $0x8] sm:$0xff] (%p192_p4)  }
  0x14   : > { %v837_v10 = vld [vmem:[%s1238_s2] sm:$0xff] (%p192_p4)   ;;  %278 = vst [vmem:[#allocation3 + $0x38] sm:$0xff] (%p192_p4), %v975_v8  ;;  %v834_v12 = vunpack.c.l.bf16 (%p192_p4), %v833_v9  ;;  %v835_v13 = vunpack.c.h.bf16 (%p192_p4), %v833_v9  ;;  %v869_v16 = vld [vmem:[%s1238_s2 + $0x10] sm:$0xff] (%p192_p4)   ;;  %v870_v17 = vld [vmem:[%s1238_s2 + $0x18] sm:$0xff] (%p192_p4)   ;;  %v842_v19 = vunpack.c.l.bf16 (%p192_p4), %v868_v11  ;;  %v843_v20 = vunpack.c.h.bf16 (%p192_p4), %v868_v11 }
  0x15   : > { %v838_v14 = vunpack.c.l.bf16 (%p192_p4), %v837_v10  ;;  %v839_v15 = vunpack.c.h.bf16 (%p192_p4), %v837_v10  ;;  %v871_v18 = vld [vmem:[%s1238_s2 + $0x20] sm:$0xff] (%p192_p4)   ;;  %v846_v21 = vunpack.c.l.bf16 (%p192_p4), %v869_v16  ;;  %v847_v22 = vunpack.c.h.bf16 (%p192_p4), %v869_v16  ;;  %v872_v23 = vld [vmem:[%s1238_s2 + $0x28] sm:$0xff] (%p192_p4)   ;;  %v873_v24 = vld [vmem:[%s1238_s2 + $0x30] sm:$0xff] (%p192_p4)  }
  0x16   : > { %v874_v25 = vld [vmem:[%s1238_s2 + $0x38] sm:$0xff]   ;;  %283 = vst [vmem:[#allocation6] sm:$0xff] %v834_v12  ;;  %284 = vst [vmem:[#allocation6 + $0x8] sm:$0xff] %v835_v13  ;;  %v850_v26 = vunpack.c.l.bf16 %v870_v17  ;;  %v851_v27 = vunpack.c.h.bf16 %v870_v17  ;;  %v854_v28 = vunpack.c.l.bf16 %v871_v18  ;;  %v855_v29 = vunpack.c.h.bf16 %v871_v18 }
  0x17   : > { %317 = vst [vmem:[#allocation7] sm:$0xff] %v838_v14  ;;  %318 = vst [vmem:[#allocation7 + $0x8] sm:$0xff] %v839_v15  ;;  %v858_v30 = vunpack.c.l.bf16 %v872_v23  ;;  %v859_v31 = vunpack.c.h.bf16 %v872_v23  ;;  %v862_v32 = vunpack.c.l.bf16 %v873_v24  ;;  %v863_v33 = vunpack.c.h.bf16 %v873_v24 }
  0x18   : > { %319 = vst [vmem:[#allocation7 + $0x10] sm:$0xff] %v842_v19  ;;  %320 = vst [vmem:[#allocation7 + $0x18] sm:$0xff] %v843_v20  ;;  %v866_v34 = vunpack.c.l.bf16 %v874_v25  ;;  %v867_v35 = vunpack.c.h.bf16 %v874_v25 }
  0x19   : > { %321 = vst [vmem:[#allocation7 + $0x20] sm:$0xff] %v846_v21  ;;  %322 = vst [vmem:[#allocation7 + $0x28] sm:$0xff] %v847_v22 }
  0x1a   : > { %323 = vst [vmem:[#allocation7 + $0x30] sm:$0xff] %v850_v26  ;;  %324 = vst [vmem:[#allocation7 + $0x38] sm:$0xff] %v851_v27 }
  0x1b   : > { %325 = vst [vmem:[#allocation7 + $0x40] sm:$0xff] %v854_v28  ;;  %326 = vst [vmem:[#allocation7 + $0x48] sm:$0xff] %v855_v29 }
  0x1c   : > { %327 = vst [vmem:[#allocation7 + $0x50] sm:$0xff] %v858_v30  ;;  %328 = vst [vmem:[#allocation7 + $0x58] sm:$0xff] %v859_v31 }
  0x1d   : > { %329 = vst [vmem:[#allocation7 + $0x60] sm:$0xff] %v862_v32  ;;  %330 = vst [vmem:[#allocation7 + $0x68] sm:$0xff] %v863_v33 }
  0x1e   : > { %331 = vst [vmem:[#allocation7 + $0x70] sm:$0xff] %v866_v34  ;;  %332 = vst [vmem:[#allocation7 + $0x78] sm:$0xff] %v867_v35 }
  0x1f PF: > { %v976_v36 = vld [vmem:[%s1236_s0] sm:$0xff]   ;;  %v1031_v37 = vmov 0.0   ;;  %vm1032_vm0 = vmmov 0   ;;  %vm423_vm1 = vcmask 130048   ;;  %p673_p5 = scmp.eq.s32.totalorder %s1021_s15, 2  ;;  %v575_v0 = vld [vmem:[#allocation7 + $0x10] sm:$0xff] }
  0x20   : > { %893 = vmatprep.subr.bf16.mxu0 %v1031_v37  ;;  %v406_v39 = vld [vmem:[#allocation2] sm:$0xff]  ;;  %407 = vxpose.xlu0.c.b16.start.end [1/1] (short) %v976_v36, 128  ;;  %v346_v40 = vld [vmem:[#allocation3 + $0x8] sm:$0xff]  ;;  %v573_v1 = vld [vmem:[#allocation7] sm:$0xff] }
  0x21   : > { %v345_v38 = vld [vmem:[#allocation3] sm:$0xff]  ;;  %913 = vmatprep.subr.bf16.mxu1 %v406_v39  ;;  %909 = vmatprep.mubr.msk.bf16.mxu0 %vm1032_vm0, %v1031_v37  ;;  %v347_v41 = vld [vmem:[#allocation3 + $0x10] sm:$0xff]  ;;  %v576_v3 = vld [vmem:[#allocation7 + $0x18] sm:$0xff] }
  0x22   : > { %894 = vmatpush3.bf16.msra.mxu0 %v345_v38  ;;  %914 = vmatpush3.bf16.msra.mxu1 %v406_v39  ;;  %v348_v42 = vld [vmem:[#allocation3 + $0x18] sm:$0xff]  ;;  %v349_v43 = vld [vmem:[#allocation3 + $0x20] sm:$0xff]  ;;  %v577_v15 = vld [vmem:[#allocation7 + $0x20] sm:$0xff] }
  0x23   : > { %895 = vmatprep.subr.bf16.mxu0 %v1031_v37  ;;  %v350_v44 = vld [vmem:[#allocation3 + $0x28] sm:$0xff]  ;;  %v351_v45 = vld [vmem:[#allocation3 + $0x30] sm:$0xff]  ;;  %v574_v6 = vld [vmem:[#allocation7 + $0x8] sm:$0xff] }
  0x24   : > { %v352_v46 = vld [vmem:[#allocation3 + $0x38] sm:$0xff]  ;;  %v579_v14 = vld [vmem:[#allocation7 + $0x30] sm:$0xff]  ;;  %v580_v17 = vld [vmem:[#allocation7 + $0x38] sm:$0xff] }
  0x25   : > { %v578_v20 = vld [vmem:[#allocation7 + $0x28] sm:$0xff]  ;;  %v583_v28 = vld [vmem:[#allocation7 + $0x50] sm:$0xff]  ;;  %v581_v29 = vld [vmem:[#allocation7 + $0x40] sm:$0xff] }
  0x26   : > { %896 = vmatpush3.bf16.msra.mxu0 %v346_v40  ;;  %v565_v55 = vld [vmem:[#allocation6] sm:$0xff]  ;;  %v566_v57 = vld [vmem:[#allocation6 + $0x8] sm:$0xff]  ;;  %v582_v34 = vld [vmem:[#allocation7 + $0x48] sm:$0xff] }
  0x27   : > { %897 = vmatprep.subr.bf16.mxu0 %v1031_v37  ;;  %v584_v31 = vld [vmem:[#allocation7 + $0x58] sm:$0xff] }
  0x2a   : > { %898 = vmatpush3.bf16.msra.mxu0 %v347_v41 }
  0x2b   : > { %899 = vmatprep.subr.bf16.mxu0 %v1031_v37 }
  0x2e   : > { %900 = vmatpush3.bf16.msra.mxu0 %v348_v42  ;;  %v587_v42 = vld [vmem:[#allocation7 + $0x70] sm:$0xff] }
  0x2f   : > { %901 = vmatprep.subr.bf16.mxu0 %v1031_v37 }
  0x32   : > { %902 = vmatpush3.bf16.msra.mxu0 %v349_v43  ;;  %v585_v43 = vld [vmem:[#allocation7 + $0x60] sm:$0xff] }
  0x33   : > { %903 = vmatprep.subr.bf16.mxu0 %v1031_v37 }
  0x36   : > { %904 = vmatpush3.bf16.msra.mxu0 %v350_v44 }
  0x37   : > { %905 = vmatprep.subr.bf16.mxu0 %v1031_v37 }
  0x3a   : > { %906 = vmatpush3.bf16.msra.mxu0 %v351_v45  ;;  %v588_v45 = vld [vmem:[#allocation7 + $0x78] sm:$0xff] }
  0x3b   : > { %907 = vmatprep.subr.bf16.mxu0 %v1031_v37 }
  0x3e   : > { %908 = vmatpush3.bf16.msra.mxu0 %v352_v46 }
  0x41   : > { %910 = vmatmul.mubr.bf16.vlgmr.msra.gmra.mrb[0].mxu0 %v976_v36 }
  0x86   : > { %v415_v47 = vpop.trf.xlu0 }
  0x87   : > { %915 = vmatprep.mubr.msk.bf16.mxu1 %vm423_vm1, %v415_v47 }
  0x8a   : > { %v416_v48 = vpop.trf.xlu0 }
  0x8b   : > { %916 = vmatmul.mubr.msk.bf16.vlgmr.msra.gmra.mrb[0].mxu1 %vm423_vm1, %v416_v48  ;;  %v586_v48 = vld [vmem:[#allocation7 + $0x68] sm:$0xff] }
  0x8e   : > { %v417_v49 = vpop.trf.xlu0 }
  0x8f   : > { %919 = vmatprep.mubr.msk.bf16.mxu1 %vm423_vm1, %v417_v49 }
  0x92   : > { %v418_v50 = vpop.trf.xlu0 }
  0x93   : > { %920 = vmatmul.mubr.msk.bf16.gmra.mrb[4].mxu1 %vm423_vm1, %v418_v50 }
  0x96   : > { %v419_v51 = vpop.trf.xlu0 }
  0x97   : > { %923 = vmatprep.mubr.msk.bf16.mxu1 %vm423_vm1, %v419_v51 }
  0x9a   : > { %v420_v52 = vpop.trf.xlu0 }
  0x9b   : > { %924 = vmatmul.mubr.msk.bf16.gmra.mrb[8].mxu1 %vm423_vm1, %v420_v52 }
  0x9e   : > { %v421_v53 = vpop.trf.xlu0 }
  0x9f   : > { %927 = vmatprep.mubr.msk.bf16.mxu1 %vm423_vm1, %v421_v53 }
  0xa2   : > { %v422_v54 = vpop.trf.xlu0 }
  0xa3   : > { %928 = vmatmul.mubr.msk.bf16.gmra.mrb[12].mxu1 %vm423_vm1, %v422_v54 }
 0x114   : > { %v395_v56 = vpop.f32.mrb[0].mxu0 }
 0x115   : > { %v569_v58 = vadd.f32 %v565_v55, %v395_v56  ;;  %v911_v59 = vpop.f32.mrb[1].mxu0 }
 0x116   : > { %v398_v60 = vpop.f32.mrb[2].mxu0 }
 0x117   : > { %571 = vst [vmem:[#allocation6] sm:$0xff] %v569_v58  ;;  %v570_v61 = vadd.f32 %v566_v57, %v398_v60  ;;  %v639_v62 = vpack.c.bf16 %v398_v60, %v395_v56  ;;  %v912_v63 = vpop.f32.mrb[3].mxu0 }
 0x119   : > { %572 = vst [vmem:[#allocation6 + $0x8] sm:$0xff] %v570_v61  ;;  %640 = vst [vmem:[#allocation2] sm:$0xff] %v639_v62 }
 0x11e   : > { %v678_v56 = vld [vmem:[#allocation6] sm:$0xff] (%p673_p5) }
 0x11f   : > { %v680_v59 = vmul.f32 (%p673_p5), 0.25, %v678_v56 }
 0x120   : > { %v679_v57 = vld [vmem:[#allocation6 + $0x8] sm:$0xff] (%p673_p5) }
 0x121   : > { %v681_v60 = vmul.f32 (%p673_p5), 0.25, %v679_v57  ;;  %682 = vst [vmem:[#allocation8] sm:$0xff] (%p673_p5), %v680_v59 }
 0x123   : > { %683 = vst [vmem:[#allocation8 + $0x8] sm:$0xff] (%p673_p5), %v681_v60 }
 0x15e   : > { %v917_v2 = vpop.f32.mrb[0].mxu1 }
 0x15f   : > { %v607_v4 = vadd.f32 %v917_v2, %v575_v0  ;;  %v482_v5 = vpop.f32.mrb[1].mxu1 }
 0x160   : > { %v605_v7 = vadd.f32 %v573_v1, %v482_v5  ;;  %v918_v8 = vpop.f32.mrb[2].mxu1 }
 0x161   : > { %623 = vst [vmem:[#allocation7 + $0x10] sm:$0xff] %v607_v4  ;;  %v608_v9 = vadd.f32 %v918_v8, %v576_v3  ;;  %v658_v10 = vpack.c.bf16 %v918_v8, %v917_v2  ;;  %v485_v11 = vpop.f32.mrb[3].mxu1 }
 0x162   : > { %621 = vst [vmem:[#allocation7] sm:$0xff] %v605_v7  ;;  %v606_v12 = vadd.f32 %v574_v6, %v485_v11  ;;  %v657_v13 = vpack.c.bf16 %v485_v11, %v482_v5 }
 0x163   : > { %624 = vst [vmem:[#allocation7 + $0x18] sm:$0xff] %v608_v9  ;;  %666 = vst [vmem:[#allocation3 + $0x8] sm:$0xff] %v658_v10 }
 0x164   : > { %622 = vst [vmem:[#allocation7 + $0x8] sm:$0xff] %v606_v12  ;;  %665 = vst [vmem:[#allocation3] sm:$0xff] %v657_v13 }
 0x166   : > { %v921_v16 = vpop.f32.mrb[4].mxu1 }
 0x167   : > { %v611_v18 = vadd.f32 %v921_v16, %v579_v14  ;;  %v498_v19 = vpop.f32.mrb[5].mxu1 }
 0x168   : > { %v609_v21 = vadd.f32 %v577_v15, %v498_v19  ;;  %v922_v22 = vpop.f32.mrb[6].mxu1  ;;  %v686_v63 = vld [vmem:[#allocation7 + $0x10] sm:$0xff] (%p673_p5) }
 0x169   : > { %627 = vst [vmem:[#allocation7 + $0x30] sm:$0xff] %v611_v18  ;;  %v612_v23 = vadd.f32 %v922_v22, %v580_v17  ;;  %v660_v24 = vpack.c.bf16 %v922_v22, %v921_v16  ;;  %v501_v25 = vpop.f32.mrb[7].mxu1  ;;  %v684_v58 = vld [vmem:[#allocation7] sm:$0xff] (%p673_p5)  ;;  %v702_v2 = vmul.f32 (%p673_p5), 0.25, %v686_v63 }
 0x16a   : > { %625 = vst [vmem:[#allocation7 + $0x20] sm:$0xff] %v609_v21  ;;  %v610_v26 = vadd.f32 %v578_v20, %v501_v25  ;;  %v659_v27 = vpack.c.bf16 %v501_v25, %v498_v19  ;;  %v700_v61 = vmul.f32 (%p673_p5), 0.25, %v684_v58  ;;  %v687_v0 = vld [vmem:[#allocation7 + $0x18] sm:$0xff] (%p673_p5) }
 0x16b   : > { %628 = vst [vmem:[#allocation7 + $0x38] sm:$0xff] %v612_v23  ;;  %668 = vst [vmem:[#allocation3 + $0x18] sm:$0xff] %v660_v24  ;;  %v685_v62 = vld [vmem:[#allocation7 + $0x8] sm:$0xff] (%p673_p5)  ;;  %v703_v3 = vmul.f32 (%p673_p5), 0.25, %v687_v0 }
 0x16c   : > { %626 = vst [vmem:[#allocation7 + $0x28] sm:$0xff] %v610_v26  ;;  %667 = vst [vmem:[#allocation3 + $0x10] sm:$0xff] %v659_v27  ;;  %v701_v1 = vmul.f32 (%p673_p5), 0.25, %v685_v62 }
 0x16d   : > { %716 = vst [vmem:[%s1240_s4] sm:$0xff] (%p673_p5), %v700_v61  ;;  %718 = vst [vmem:[%s1240_s4 + $0x10] sm:$0xff] (%p673_p5), %v702_v2 }
 0x16e   : > { %v925_v30 = vpop.f32.mrb[8].mxu1  ;;  %717 = vst [vmem:[%s1240_s4 + $0x8] sm:$0xff] (%p673_p5), %v701_v1  ;;  %719 = vst [vmem:[%s1240_s4 + $0x18] sm:$0xff] (%p673_p5), %v703_v3 }
 0x16f   : > { %v615_v32 = vadd.f32 %v925_v30, %v583_v28  ;;  %v514_v33 = vpop.f32.mrb[9].mxu1 }
 0x170   : > { %v613_v35 = vadd.f32 %v581_v29, %v514_v33  ;;  %v926_v36 = vpop.f32.mrb[10].mxu1  ;;  %v690_v6 = vld [vmem:[#allocation7 + $0x30] sm:$0xff] (%p673_p5) }
 0x171   : > { %631 = vst [vmem:[#allocation7 + $0x50] sm:$0xff] %v615_v32  ;;  %v616_v37 = vadd.f32 %v926_v36, %v584_v31  ;;  %v662_v38 = vpack.c.bf16 %v926_v36, %v925_v30  ;;  %v517_v39 = vpop.f32.mrb[11].mxu1  ;;  %v688_v4 = vld [vmem:[#allocation7 + $0x20] sm:$0xff] (%p673_p5)  ;;  %v706_v9 = vmul.f32 (%p673_p5), 0.25, %v690_v6 }
 0x172   : > { %629 = vst [vmem:[#allocation7 + $0x40] sm:$0xff] %v613_v35  ;;  %v614_v40 = vadd.f32 %v582_v34, %v517_v39  ;;  %v661_v41 = vpack.c.bf16 %v517_v39, %v514_v33  ;;  %v704_v7 = vmul.f32 (%p673_p5), 0.25, %v688_v4  ;;  %v691_v10 = vld [vmem:[#allocation7 + $0x38] sm:$0xff] (%p673_p5) }
 0x173   : > { %632 = vst [vmem:[#allocation7 + $0x58] sm:$0xff] %v616_v37  ;;  %670 = vst [vmem:[#allocation3 + $0x28] sm:$0xff] %v662_v38  ;;  %v689_v5 = vld [vmem:[#allocation7 + $0x28] sm:$0xff] (%p673_p5)  ;;  %v707_v13 = vmul.f32 (%p673_p5), 0.25, %v691_v10 }
 0x174   : > { %630 = vst [vmem:[#allocation7 + $0x48] sm:$0xff] %v614_v40  ;;  %669 = vst [vmem:[#allocation3 + $0x20] sm:$0xff] %v661_v41  ;;  %v705_v8 = vmul.f32 (%p673_p5), 0.25, %v689_v5 }
 0x175   : > { %720 = vst [vmem:[%s1240_s4 + $0x20] sm:$0xff] (%p673_p5), %v704_v7  ;;  %722 = vst [vmem:[%s1240_s4 + $0x30] sm:$0xff] (%p673_p5), %v706_v9 }
 0x176   : > { %v929_v44 = vpop.f32.mrb[12].mxu1  ;;  %677 = sbr.rel (!%p673_p5) target bundleno = 391 (0x187), region = 48  ;;  %721 = vst [vmem:[%s1240_s4 + $0x28] sm:$0xff] (%p673_p5), %v705_v8  ;;  %723 = vst [vmem:[%s1240_s4 + $0x38] sm:$0xff] (%p673_p5), %v707_v13 }
 0x177   : > { %v619_v46 = vadd.f32 %v929_v44, %v587_v42  ;;  %v530_v47 = vpop.f32.mrb[13].mxu1 }
 0x178   : > { %v617_v49 = vadd.f32 %v585_v43, %v530_v47  ;;  %v930_v50 = vpop.f32.mrb[14].mxu1  ;;  %v694_v16 = vld [vmem:[#allocation7 + $0x50] sm:$0xff] (%p673_p5) }
 0x179   : > { %635 = vst [vmem:[#allocation7 + $0x70] sm:$0xff] %v619_v46  ;;  %v620_v51 = vadd.f32 %v930_v50, %v588_v45  ;;  %v664_v52 = vpack.c.bf16 %v930_v50, %v929_v44  ;;  %v533_v53 = vpop.f32.mrb[15].mxu1  ;;  %v692_v11 = vld [vmem:[#allocation7 + $0x40] sm:$0xff] (%p673_p5)  ;;  %v710_v19 = vmul.f32 (%p673_p5), 0.25, %v694_v16 }
 0x17a   : > { %633 = vst [vmem:[#allocation7 + $0x60] sm:$0xff] %v617_v49  ;;  %v618_v54 = vadd.f32 %v586_v48, %v533_v53  ;;  %v663_v55 = vpack.c.bf16 %v533_v53, %v530_v47  ;;  %v708_v14 = vmul.f32 (%p673_p5), 0.25, %v692_v11  ;;  %v695_v17 = vld [vmem:[#allocation7 + $0x58] sm:$0xff] (%p673_p5) }
 0x17b   : > { %636 = vst [vmem:[#allocation7 + $0x78] sm:$0xff] %v620_v51  ;;  %672 = vst [vmem:[#allocation3 + $0x38] sm:$0xff] %v664_v52  ;;  %v693_v12 = vld [vmem:[#allocation7 + $0x48] sm:$0xff] (%p673_p5)  ;;  %v711_v20 = vmul.f32 (%p673_p5), 0.25, %v695_v17 }
 0x17c   : > { %634 = vst [vmem:[#allocation7 + $0x68] sm:$0xff] %v618_v54  ;;  %671 = vst [vmem:[#allocation3 + $0x30] sm:$0xff] %v663_v55  ;;  %v709_v15 = vmul.f32 (%p673_p5), 0.25, %v693_v12 }
 0x17d   : > { %724 = vst [vmem:[%s1240_s4 + $0x40] sm:$0xff] %v708_v14  ;;  %726 = vst [vmem:[%s1240_s4 + $0x50] sm:$0xff] %v710_v19 }
 0x17e   : > { %725 = vst [vmem:[%s1240_s4 + $0x48] sm:$0xff] %v709_v15  ;;  %727 = vst [vmem:[%s1240_s4 + $0x58] sm:$0xff] %v711_v20 }
 0x180   : > { %v698_v23 = vld [vmem:[#allocation7 + $0x70] sm:$0xff] }
 0x181   : > { %v696_v18 = vld [vmem:[#allocation7 + $0x60] sm:$0xff]  ;;  %v714_v26 = vmul.f32 0.25, %v698_v23 }
 0x182   : > { %v712_v21 = vmul.f32 0.25, %v696_v18  ;;  %v699_v24 = vld [vmem:[#allocation7 + $0x78] sm:$0xff] }
 0x183   : > { %v697_v22 = vld [vmem:[#allocation7 + $0x68] sm:$0xff]  ;;  %v715_v27 = vmul.f32 0.25, %v699_v24  ;;  %730 = vst [vmem:[%s1240_s4 + $0x70] sm:$0xff] %v714_v26 }
 0x184   : > { %v713_v25 = vmul.f32 0.25, %v697_v22  ;;  %728 = vst [vmem:[%s1240_s4 + $0x60] sm:$0xff] %v712_v21 }
 0x185   : > { %731 = vst [vmem:[%s1240_s4 + $0x78] sm:$0xff] %v715_v27 }
 0x186   : > { %729 = vst [vmem:[%s1240_s4 + $0x68] sm:$0xff] %v713_v25 }
 0x187 PF: > { %p1201_p6 = scmp.eq.s32.totalorder %s802_s18, 2  ;;  %s1033_s26 = smov [#allocation8]  }
 0x188   : > { %s738_s27 = sshll.u32 %s1033_s26, 4  ;;  %s739_s27 = int_to_ptr.vmem [resolvable:$true] %s738_s27 }
 0x189   : > { %s977_s28 = scalar_lea.vmem %s739_s27, 256  ;;  %p984_p10 = scmp.lt.s32.totalorder %s739_s27, %s739_s27 }
 0x18a   : > { %p978_p7 = scmp.ne.s32.totalorder %s739_s27, %s977_s28  ;;  %p985_p11 = scmp.lt.s32.totalorder %s977_s28, %s977_s28 }
 0x18c   : > { %p979_p8 = pnand %p978_p7, %p1201_p6  ;;  %p986_p12 = por %p985_p11, %p984_p10 }
 0x18e   : > { %p980_p9 = pneg %p979_p8 }
 0x190   : > { %p987_p13 = pnand %p986_p12, %p980_p9 }
 0x192   : > { %990 = shalt.err (!%p987_p13)
}
 0x193   : > { %s991_s18 = scalar_lea.hbm %s1239_s3, 256 }
 0x194   : > { %p992_p0 = scmp.ne.s32.totalorder %s1239_s3, %s991_s18  ;;  %p997_p3 = scmp.lt.u32.totalorder %s991_s18, %s1239_s3 }
 0x196   : > { %p993_p1 = pnand %p992_p0, %p1201_p6 }
 0x198   : > { %p994_p2 = pneg %p993_p1 }
 0x19a   : > { %p999_p4 = pnand %p997_p3, %p994_p2 }
 0x19c   : > { %1002 = shalt.err (!%p999_p4)
}
 0x19d   : > { %s1034_s9 = smov 128   ;;  %s1035_s10 = smov 8  }
 0x19e   : > { %932 = dma.vmem_to_hbm [thread:$0]  (%p1201_p6), %s739_s27, 256, %s1239_s3, [#allocation9], %s1034_s9, %s1034_s9, %s1035_s10  }
 0x19f   : > { %1016 = dma.done.wait (%p1201_p6), [#allocation9], 256  }
 0x1a0   : > { %1018 = vsyncadd (%p1201_p6), [#allocation9], 4294967040 }
 0x1a1 PF: > { %s16_s17 = sadd.s32 1, %s1029_s17   ;;  %s1242_s15 = smov %s1025_s16 }
 0x1a2   : > { %p13_p5 = scmp.ge.s32.totalorder %s16_s17, 5   ;;  %s1243_s16 = smov %s1245_s19 }
 0x1a4   :  { %15 = sbr.rel (!%p13_p5) target bundleno = 2 (0x2), region = 85 }
 0x1ab   :  { %760 = vsyncpa [#allocation9], 1 }
 0x1ac   :  { %762 = vsyncpa [#allocation9 + $0x1], 1 }

</bundles_post_ra>
